<compile_context>
chip_gen: v7x
topology: tpu7x:2x2x1
jax: 0.10.0
libtpu: 0.0.40
codegen_flags: <defaults>
</compile_context>

<pallas_src>
import functools

import numpy as np
import jax
import jax.numpy as jnp
from jax.experimental import pallas as pl
from jax.experimental.pallas import tpu as pltpu


# ---------------------------------------------------------------------------
# In-kernel helpers (operate on traced jnp values inside a kernel body)
# ---------------------------------------------------------------------------

def _layer_norm(x, gamma, beta):
    # PyTorch LayerNorm: biased variance, eps=1e-5, affine last.
    mean = jnp.mean(x, axis=-1, keepdims=True)
    var = jnp.mean(jnp.square(x - mean), axis=-1, keepdims=True)
    return (x - mean) * jax.lax.rsqrt(var + 1e-5) * gamma + beta


def _mha_core(q_all, k_all, v_all, num_heads, attn_out_ref=None):
    """q_all: [Sq, F], k_all/v_all: [Sk, F].  Heads are lane slices of F.

    Returns the head-concatenated context [Sq, F]; optionally writes the
    softmax attention weights for head h to attn_out_ref[0, h] ([Sq, Sk]).
    """
    F = q_all.shape[-1]
    depth = F // num_heads
    scale = 1.0 / float(np.sqrt(depth))
    outs = []
    for h in range(num_heads):
        lo = h * depth
        q_h = q_all[:, lo:lo + depth]
        k_h = k_all[:, lo:lo + depth]
        v_h = v_all[:, lo:lo + depth]
        # Q @ K^T without an explicit transpose (contract last axes of both).
        scores = jax.lax.dot_general(
            q_h, k_h, (((1,), (1,)), ((), ())),
            preferred_element_type=jnp.float32) * scale
        scores = scores - jnp.max(scores, axis=-1, keepdims=True)
        e = jnp.exp(scores)
        attn = e / jnp.sum(e, axis=-1, keepdims=True)
        outs.append(jnp.dot(attn, v_h, preferred_element_type=jnp.float32))
        if attn_out_ref is not None:
            attn_out_ref[0, h] = attn.astype(attn_out_ref.dtype)
    return jnp.concatenate(outs, axis=-1)


# ---------------------------------------------------------------------------
# Fused per-layer Pallas kernels
# ---------------------------------------------------------------------------

def _encoder_layer_kernel(x_ref, wqkv_ref, bqkv_ref, wo_ref, bo_ref,
                          ln1g_ref, ln1b_ref,
                          w1_ref, b1_ref, w2_ref, b2_ref,
                          ln2g_ref, ln2b_ref,
                          o_ref, *, num_heads):
    x = x_ref[0]                       # [S, F]
    F = x.shape[-1]

    # Fused Q/K/V projection: one [S,F] @ [F,3F] matmul.
    qkv = jnp.dot(x, wqkv_ref[...], preferred_element_type=jnp.float32) + bqkv_ref[...]
    concat = _mha_core(qkv[:, :F], qkv[:, F:2 * F], qkv[:, 2 * F:], num_heads)
    attn_out = (jnp.dot(concat, wo_ref[...], preferred_element_type=jnp.float32)
                + bo_ref[...])
    out1 = _layer_norm(x + attn_out, ln1g_ref[...], ln1b_ref[...])

    # FFN (fused with residual + LayerNorm).
    h = jnp.maximum(
        jnp.dot(out1, w1_ref[...], preferred_element_type=jnp.float32) + b1_ref[...],
        0.0)
    ffn_out = (jnp.dot(h, w2_ref[...], preferred_element_type=jnp.float32)
               + b2_ref[...])
    out2 = _layer_norm(out1 + ffn_out, ln2g_ref[...], ln2b_ref[...])

    o_ref[0] = out2.astype(o_ref.dtype)


def _decoder_layer_kernel(x_ref, enc_ref,
                          wqkv1_ref, bqkv1_ref, wo1_ref, bo1_ref,
                          ln1g_ref, ln1b_ref,
                          wq2_ref, bq2_ref, wkv2_ref, bkv2_ref, wo2_ref, bo2_ref,
                          ln2g_ref, ln2b_ref,
                          w1_ref, b1_ref, w2_ref, b2_ref,
                          ln3g_ref, ln3b_ref,
                          o_ref, attn1_ref, attn2_ref, *, num_heads):
    x = x_ref[0]                       # [St, F]
    enc = enc_ref[0]                   # [Si, F]
    F = x.shape[-1]

    # --- block 1: masked self-attention (mask=None in this reference) ---
    qkv1 = (jnp.dot(x, wqkv1_ref[...], preferred_element_type=jnp.float32)
            + bqkv1_ref[...])
    concat1 = _mha_core(qkv1[:, :F], qkv1[:, F:2 * F], qkv1[:, 2 * F:],
                        num_heads, attn1_ref)
    attn1 = (jnp.dot(concat1, wo1_ref[...], preferred_element_type=jnp.float32)
             + bo1_ref[...])
    out1 = _layer_norm(attn1 + x, ln1g_ref[...], ln1b_ref[...])

    # --- block 2: cross-attention over encoder output (fused KV weight) ---
    q2 = (jnp.dot(out1, wq2_ref[...], preferred_element_type=jnp.float32)
          + bq2_ref[...])
    kv2 = (jnp.dot(enc, wkv2_ref[...], preferred_element_type=jnp.float32)
           + bkv2_ref[...])
    concat2 = _mha_core(q2, kv2[:, :F], kv2[:, F:], num_heads, attn2_ref)
    attn2 = (jnp.dot(concat2, wo2_ref[...], preferred_element_type=jnp.float32)
             + bo2_ref[...])
    out2 = _layer_norm(attn2 + out1, ln2g_ref[...], ln2b_ref[...])

    # --- FFN ---
    h = jnp.maximum(
        jnp.dot(out2, w1_ref[...], preferred_element_type=jnp.float32) + b1_ref[...],
        0.0)
    ffn_out = (jnp.dot(h, w2_ref[...], preferred_element_type=jnp.float32)
               + b2_ref[...])
    out3 = _layer_norm(ffn_out + out2, ln3g_ref[...], ln3b_ref[...])

    o_ref[0] = out3.astype(o_ref.dtype)


def _linear_kernel(x_ref, w_ref, b_ref, o_ref):
    y = jnp.dot(x_ref[...], w_ref[...], preferred_element_type=jnp.float32)
    o_ref[...] = (y + b_ref[...]).astype(o_ref.dtype)


# ---------------------------------------------------------------------------
# Pallas call wrappers
# ---------------------------------------------------------------------------

def encoder_layer(p, x, num_heads):
    """x: [B, S, F] -> [B, S, F]; whole layer fused in one pallas_call."""
    B, S, F = x.shape
    FF = p["w1"].shape[1]
    kernel = functools.partial(_encoder_layer_kernel, num_heads=num_heads)
    return pl.pallas_call(
        kernel,
        grid=(B,),
        out_shape=jax.ShapeDtypeStruct((B, S, F), x.dtype),
        in_specs=[
            pl.BlockSpec((1, S, F), lambda b: (b, 0, 0)),      # x
            pl.BlockSpec((F, 3 * F), lambda b: (0, 0)),        # wqkv
            pl.BlockSpec((1, 3 * F), lambda b: (0, 0)),        # bqkv
            pl.BlockSpec((F, F), lambda b: (0, 0)),            # wo
            pl.BlockSpec((1, F), lambda b: (0, 0)),            # bo
            pl.BlockSpec((1, F), lambda b: (0, 0)),            # ln1_g
            pl.BlockSpec((1, F), lambda b: (0, 0)),            # ln1_b
            pl.BlockSpec((F, FF), lambda b: (0, 0)),           # w1
            pl.BlockSpec((1, FF), lambda b: (0, 0)),           # b1
            pl.BlockSpec((FF, F), lambda b: (0, 0)),           # w2
            pl.BlockSpec((1, F), lambda b: (0, 0)),            # b2
            pl.BlockSpec((1, F), lambda b: (0, 0)),            # ln2_g
            pl.BlockSpec((1, F), lambda b: (0, 0)),            # ln2_b
        ],
        out_specs=pl.BlockSpec((1, S, F), lambda b: (b, 0, 0)),
        compiler_params=pltpu.CompilerParams(dimension_semantics=("parallel",)),
    )(x, p["wqkv"], p["bqkv"].reshape(1, -1), p["wo"], p["bo"].reshape(1, -1),
      p["ln1_g"].reshape(1, -1), p["ln1_b"].reshape(1, -1),
      p["w1"], p["b1"].reshape(1, -1), p["w2"], p["b2"].reshape(1, -1),
      p["ln2_g"].reshape(1, -1), p["ln2_b"].reshape(1, -1))


def decoder_layer(p, x, enc_output, num_heads):
    """x: [B, St, F], enc_output: [B, Si, F] -> (y, attn1, attn2)."""
    B, St, F = x.shape
    Si = enc_output.shape[1]
    FF = p["w1"].shape[1]
    H = num_heads
    kernel = functools.partial(_decoder_layer_kernel, num_heads=num_heads)
    return pl.pallas_call(
        kernel,
        grid=(B,),
        out_shape=(
            jax.ShapeDtypeStruct((B, St, F), x.dtype),
            jax.ShapeDtypeStruct((B, H, St, St), x.dtype),
            jax.ShapeDtypeStruct((B, H, St, Si), x.dtype),
        ),
        in_specs=[
            pl.BlockSpec((1, St, F), lambda b: (b, 0, 0)),     # x
            pl.BlockSpec((1, Si, F), lambda b: (b, 0, 0)),     # enc_output
            pl.BlockSpec((F, 3 * F), lambda b: (0, 0)),        # wqkv1
            pl.BlockSpec((1, 3 * F), lambda b: (0, 0)),        # bqkv1
            pl.BlockSpec((F, F), lambda b: (0, 0)),            # wo1
            pl.BlockSpec((1, F), lambda b: (0, 0)),            # bo1
            pl.BlockSpec((1, F), lambda b: (0, 0)),            # ln1_g
            pl.BlockSpec((1, F), lambda b: (0, 0)),            # ln1_b
            pl.BlockSpec((F, F), lambda b: (0, 0)),            # wq2
            pl.BlockSpec((1, F), lambda b: (0, 0)),            # bq2
            pl.BlockSpec((F, 2 * F), lambda b: (0, 0)),        # wkv2
            pl.BlockSpec((1, 2 * F), lambda b: (0, 0)),        # bkv2
            pl.BlockSpec((F, F), lambda b: (0, 0)),            # wo2
            pl.BlockSpec((1, F), lambda b: (0, 0)),            # bo2
            pl.BlockSpec((1, F), lambda b: (0, 0)),            # ln2_g
            pl.BlockSpec((1, F), lambda b: (0, 0)),            # ln2_b
            pl.BlockSpec((F, FF), lambda b: (0, 0)),           # w1
            pl.BlockSpec((1, FF), lambda b: (0, 0)),           # b1
            pl.BlockSpec((FF, F), lambda b: (0, 0)),           # w2
            pl.BlockSpec((1, F), lambda b: (0, 0)),            # b2
            pl.BlockSpec((1, F), lambda b: (0, 0)),            # ln3_g
            pl.BlockSpec((1, F), lambda b: (0, 0)),            # ln3_b
        ],
        out_specs=(
            pl.BlockSpec((1, St, F), lambda b: (b, 0, 0)),
            pl.BlockSpec((1, H, St, St), lambda b: (b, 0, 0, 0)),
            pl.BlockSpec((1, H, St, Si), lambda b: (b, 0, 0, 0)),
        ),
        compiler_params=pltpu.CompilerParams(dimension_semantics=("parallel",)),
    )(x, enc_output,
      p["wqkv1"], p["bqkv1"].reshape(1, -1), p["wo1"], p["bo1"].reshape(1, -1),
      p["ln1_g"].reshape(1, -1), p["ln1_b"].reshape(1, -1),
      p["wq2"], p["bq2"].reshape(1, -1), p["wkv2"], p["bkv2"].reshape(1, -1),
      p["wo2"], p["bo2"].reshape(1, -1),
      p["ln2_g"].reshape(1, -1), p["ln2_b"].reshape(1, -1),
      p["w1"], p["b1"].reshape(1, -1), p["w2"], p["b2"].reshape(1, -1),
      p["ln3_g"].reshape(1, -1), p["ln3_b"].reshape(1, -1))


def final_projection(x2d, w_pad, b_pad):
    """x2d: [M, F], w_pad: [F, Npad] (lane-dense, Npad multiple of 128)."""
    M, F = x2d.shape
    Npad = w_pad.shape[1]
    return pl.pallas_call(
        _linear_kernel,
        grid=(1,),
        out_shape=jax.ShapeDtypeStruct((M, Npad), x2d.dtype),
        in_specs=[
            pl.BlockSpec((M, F), lambda i: (0, 0)),
            pl.BlockSpec((F, Npad), lambda i: (0, 0)),
            pl.BlockSpec((1, Npad), lambda i: (0, 0)),
        ],
        out_specs=pl.BlockSpec((M, Npad), lambda i: (0, 0)),
    )(x2d, w_pad, b_pad.reshape(1, Npad))


# ---------------------------------------------------------------------------
# Model (embedding / positional encoding glue in plain JAX)
# ---------------------------------------------------------------------------

def positional_encoding(position, features):
    pos = np.arange(position, dtype=np.float64)[:, None]
    i = np.arange(features, dtype=np.float64)[None, :]
    angle = pos / np.power(10000.0, (2.0 * np.floor(i / 2.0)) / features)
    angle[:, 0::2] = np.sin(angle[:, 0::2])
    angle[:, 1::2] = np.cos(angle[:, 1::2])
    return jnp.asarray(angle[None], dtype=jnp.float32)  # [1, position, features]


def embed_and_position(emb, pos_enc, tokens, features):
    # TODO(synk): embedding gather stays in plain JAX (no tiled Pallas win at this scale).
    x = jnp.take(emb, tokens, axis=0)                   # [B, S, F]
    x = x * jnp.sqrt(jnp.float32(features))             # intended sqrt(d_model) scale
    x = x + pos_enc[:, : x.shape[1], :]
    return x                                            # dropout = identity (eval)


def transformer_forward(params, inp, tar, enc_padding_mask, look_ahead_mask,
                        dec_padding_mask):
    assert enc_padding_mask is None and look_ahead_mask is None and \
        dec_padding_mask is None, "reference semantics only defined for mask=None"
    F = params["features"]
    H = params["num_heads"]

    # Encoder: one fused pallas_call per layer.
    x = embed_and_position(params["enc_emb"], params["enc_pos"], inp, F)
    for lp in params["enc_layers"]:
        x = encoder_layer(lp, x, H)
    enc_output = x

    # Decoder: one fused pallas_call per layer (returns both attention maps).
    y = embed_and_position(params["dec_emb"], params["dec_pos"], tar, F)
    attention_weights = {}
    for i, lp in enumerate(params["dec_layers"]):
        y, b1, b2 = decoder_layer(lp, y, enc_output, H)
        attention_weights[f"decoder_layer{i + 1}_block1"] = b1
        attention_weights[f"decoder_layer{i + 1}_block2"] = b2

    # Final projection (lane-dense padded output, sliced back to vocab width).
    B, St, _ = y.shape
    V = params["target_vocab_size"]
    logits_pad = final_projection(y.reshape(B * St, F),
                                  params["final_w_pad"], params["final_b_pad"])
    final = logits_pad[:, :V].reshape(B, St, V)
    return final, attention_weights


# ---------------------------------------------------------------------------
# Deterministic parameter initialization (matches nn.Module shapes)
# ---------------------------------------------------------------------------

def init_linear_params(key, in_f, out_f):
    k1, k2 = jax.random.split(key)
    bound = 1.0 / np.sqrt(in_f)
    # stored pre-transposed: [in, out]  (PyTorch stores [out, in])
    w = jax.random.uniform(k1, (in_f, out_f), jnp.float32, -bound, bound)
    b = jax.random.uniform(k2, (out_f,), jnp.float32, -bound, bound)
    return w, b


def _init_mha_fused_qkv(key, features):
    kq, kk, kv, kf = jax.random.split(key, 4)
    wq, bq = init_linear_params(kq, features, features)
    wk, bk = init_linear_params(kk, features, features)
    wv, bv = init_linear_params(kv, features, features)
    wo, bo = init_linear_params(kf, features, features)
    return {
        "wqkv": jnp.concatenate([wq, wk, wv], axis=1),   # [F, 3F]
        "bqkv": jnp.concatenate([bq, bk, bv]),           # [3F]
        "wo": wo, "bo": bo,
    }


def _init_mha_cross(key, features):
    kq, kk, kv, kf = jax.random.split(key, 4)
    wq, bq = init_linear_params(kq, features, features)
    wk, bk = init_linear_params(kk, features, features)
    wv, bv = init_linear_params(kv, features, features)
    wo, bo = init_linear_params(kf, features, features)
    return {
        "wq": wq, "bq": bq,
        "wkv": jnp.concatenate([wk, wv], axis=1),        # [F, 2F]
        "bkv": jnp.concatenate([bk, bv]),                # [2F]
        "wo": wo, "bo": bo,
    }


def init_encoder_layer(key, features, fffeatures):
    k1, k2, k3 = jax.random.split(key, 3)
    mha = _init_mha_fused_qkv(k1, features)
    w1, b1 = init_linear_params(k2, features, fffeatures)
    w2, b2 = init_linear_params(k3, fffeatures, features)
    return {
        "wqkv": mha["wqkv"], "bqkv": mha["bqkv"],
        "wo": mha["wo"], "bo": mha["bo"],
        "w1": w1, "b1": b1, "w2": w2, "b2": b2,
        "ln1_g": jnp.ones((features,), jnp.float32),
        "ln1_b": jnp.zeros((features,), jnp.float32),
        "ln2_g": jnp.ones((features,), jnp.float32),
        "ln2_b": jnp.zeros((features,), jnp.float32),
    }


def init_decoder_layer(key, features, fffeatures):
    k1, k2, k3, k4 = jax.random.split(key, 4)
    mha1 = _init_mha_fused_qkv(k1, features)
    mha2 = _init_mha_cross(k2, features)
    w1, b1 = init_linear_params(k3, features, fffeatures)
    w2, b2 = init_linear_params(k4, fffeatures, features)
    return {
        "wqkv1": mha1["wqkv"], "bqkv1": mha1["bqkv"],
        "wo1": mha1["wo"], "bo1": mha1["bo"],
        "wq2": mha2["wq"], "bq2": mha2["bq"],
        "wkv2": mha2["wkv"], "bkv2": mha2["bkv"],
        "wo2": mha2["wo"], "bo2": mha2["bo"],
        "w1": w1, "b1": b1, "w2": w2, "b2": b2,
        "ln1_g": jnp.ones((features,), jnp.float32),
        "ln1_b": jnp.zeros((features,), jnp.float32),
        "ln2_g": jnp.ones((features,), jnp.float32),
        "ln2_b": jnp.zeros((features,), jnp.float32),
        "ln3_g": jnp.ones((features,), jnp.float32),
        "ln3_b": jnp.zeros((features,), jnp.float32),
    }


def init_transformer(key, num_layers, features, num_heads, fffeatures,
                     input_vocab_size, target_vocab_size, pe_input, pe_target):
    keys = jax.random.split(key, 3 + 2 * num_layers)
    enc_emb = jax.random.normal(keys[0], (input_vocab_size, features), jnp.float32)
    dec_emb = jax.random.normal(keys[1], (target_vocab_size, features), jnp.float32)
    final_w, final_b = init_linear_params(keys[2], features, target_vocab_size)
    # Lane-dense padding for the final projection (vocab -> multiple of 128).
    vpad = ((target_vocab_size + 127) // 128) * 128
    final_w_pad = jnp.pad(final_w, ((0, 0), (0, vpad - target_vocab_size)))
    final_b_pad = jnp.pad(final_b, (0, vpad - target_vocab_size))
    enc_layers = [init_encoder_layer(keys[3 + i], features, fffeatures)
                  for i in range(num_layers)]
    dec_layers = [init_decoder_layer(keys[3 + num_layers + i], features, fffeatures)
                  for i in range(num_layers)]
    return {
        "features": features,
        "num_heads": num_heads,
        "target_vocab_size": target_vocab_size,
        "enc_emb": enc_emb,
        "dec_emb": dec_emb,
        "enc_pos": positional_encoding(pe_input, features),
        "dec_pos": positional_encoding(pe_target, features),
        "enc_layers": enc_layers,
        "dec_layers": dec_layers,
        "final_w_pad": final_w_pad,
        "final_b_pad": final_b_pad,
    }


# ---------------------------------------------------------------------------

if __name__ == "__main__":
    num_layers = 2
    features = 32
    num_heads = 4
    fffeatures = 64
    input_vocab_size = 50
    target_vocab_size = 50
    pe_input = 16
    pe_target = 16
    B, S_in, S_tar = 2, 8, 8

    root = jax.random.PRNGKey(0)
    k_params, k_inp, k_tar = jax.random.split(root, 3)
    params = init_transformer(k_params, num_layers, features, num_heads,
                              fffeatures, input_vocab_size, target_vocab_size,
                              pe_input, pe_target)

    inp = jax.random.randint(k_inp, (B, S_in), 0, input_vocab_size, dtype=jnp.int32)
    tar = jax.random.randint(k_tar, (B, S_tar), 0, target_vocab_size, dtype=jnp.int32)

    final_output, attention_weights = transformer_forward(
        params, inp, tar, None, None, None)
    jax.block_until_ready(final_output)
    jax.block_until_ready(attention_weights)

    assert final_output.shape == (B, S_tar, target_vocab_size)
    for i in range(num_layers):
        assert attention_weights[f"decoder_layer{i+1}_block1"].shape == \
            (B, num_heads, S_tar, S_tar)
        assert attention_weights[f"decoder_layer{i+1}_block2"].shape == \
            (B, num_heads, S_tar, S_in)
    assert bool(jnp.all(jnp.isfinite(final_output)))
    print("KERNEL_OK")
</pallas_src>

<mosaic_0001>
module attributes {stable_mosaic.version = 11 : i64} {
  func.func @_encoder_layer_kernel(%arg0: i32, %arg1: memref<1x8x32xf32, #tpu.memory_space<vmem>>, %arg2: memref<32x96xf32, #tpu.memory_space<vmem>>, %arg3: memref<1x96xf32, #tpu.memory_space<vmem>>, %arg4: memref<32x32xf32, #tpu.memory_space<vmem>>, %arg5: memref<1x32xf32, #tpu.memory_space<vmem>>, %arg6: memref<1x32xf32, #tpu.memory_space<vmem>>, %arg7: memref<1x32xf32, #tpu.memory_space<vmem>>, %arg8: memref<32x64xf32, #tpu.memory_space<vmem>>, %arg9: memref<1x64xf32, #tpu.memory_space<vmem>>, %arg10: memref<64x32xf32, #tpu.memory_space<vmem>>, %arg11: memref<1x32xf32, #tpu.memory_space<vmem>>, %arg12: memref<1x32xf32, #tpu.memory_space<vmem>>, %arg13: memref<1x32xf32, #tpu.memory_space<vmem>>, %arg14: memref<1x8x32xf32, #tpu.memory_space<vmem>>) attributes {dimension_semantics = [#tpu.dimension_semantics<parallel>], iteration_bounds = array<i64: 2>, scalar_prefetch = 0 : i64, scratch_operands = 0 : i64, tpu.core_type = #tpu.core_type<tc>, window_params = [{transform_indices = @transform_0, window_bounds = array<i64: 1, 8, 32>}, {pipeline_mode = #tpu.pipeline_mode<synchronous>, transform_indices = @transform_1, window_bounds = array<i64: 32, 96>}, {pipeline_mode = #tpu.pipeline_mode<synchronous>, transform_indices = @transform_2, window_bounds = array<i64: 1, 96>}, {pipeline_mode = #tpu.pipeline_mode<synchronous>, transform_indices = @transform_3, window_bounds = array<i64: 32, 32>}, {pipeline_mode = #tpu.pipeline_mode<synchronous>, transform_indices = @transform_4, window_bounds = array<i64: 1, 32>}, {pipeline_mode = #tpu.pipeline_mode<synchronous>, transform_indices = @transform_5, window_bounds = array<i64: 1, 32>}, {pipeline_mode = #tpu.pipeline_mode<synchronous>, transform_indices = @transform_6, window_bounds = array<i64: 1, 32>}, {pipeline_mode = #tpu.pipeline_mode<synchronous>, transform_indices = @transform_7, window_bounds = array<i64: 32, 64>}, {pipeline_mode = #tpu.pipeline_mode<synchronous>, transform_indices = @transform_8, window_bounds = array<i64: 1, 64>}, {pipeline_mode = #tpu.pipeline_mode<synchronous>, transform_indices = @transform_9, window_bounds = array<i64: 64, 32>}, {pipeline_mode = #tpu.pipeline_mode<synchronous>, transform_indices = @transform_10, window_bounds = array<i64: 1, 32>}, {pipeline_mode = #tpu.pipeline_mode<synchronous>, transform_indices = @transform_11, window_bounds = array<i64: 1, 32>}, {pipeline_mode = #tpu.pipeline_mode<synchronous>, transform_indices = @transform_12, window_bounds = array<i64: 1, 32>}, {transform_indices = @transform_13, window_bounds = array<i64: 1, 8, 32>}]} {
    %c0 = arith.constant 0 : index
    %c0_0 = arith.constant 0 : index
    %c0_1 = arith.constant 0 : index
    %0 = vector.load %arg1[%c0, %c0_0, %c0_1] : memref<1x8x32xf32, #tpu.memory_space<vmem>>, vector<1x8x32xf32>
    %1 = vector.shape_cast %0 : vector<1x8x32xf32> to vector<8x32xf32>
    %c0_2 = arith.constant 0 : index
    %c0_3 = arith.constant 0 : index
    %2 = vector.load %arg2[%c0_2, %c0_3] : memref<32x96xf32, #tpu.memory_space<vmem>>, vector<32x96xf32>
    %cst = arith.constant dense<0.000000e+00> : vector<8x96xf32>
    %3 = tpu.matmul %1, %2, %cst {dimension_numbers = #tpu.dot_dimension_numbers<[1], [0], [0], [1], [0, 0, 1, 1], [], []>} : vector<8x32xf32>, vector<32x96xf32>, vector<8x96xf32> -> vector<8x96xf32>
    %c0_4 = arith.constant 0 : index
    %c0_5 = arith.constant 0 : index
    %4 = vector.load %arg3[%c0_4, %c0_5] : memref<1x96xf32, #tpu.memory_space<vmem>>, vector<1x96xf32>
    %5 = vector.broadcast %4 : vector<1x96xf32> to vector<8x96xf32>
    %6 = arith.addf %3, %5 : vector<8x96xf32>
    %7 = vector.extract_strided_slice %6 {offsets = [0, 0], sizes = [8, 32], strides = [1, 1]} : vector<8x96xf32> to vector<8x32xf32>
    %8 = vector.extract_strided_slice %6 {offsets = [0, 32], sizes = [8, 32], strides = [1, 1]} : vector<8x96xf32> to vector<8x32xf32>
    %9 = vector.extract_strided_slice %6 {offsets = [0, 64], sizes = [8, 32], strides = [1, 1]} : vector<8x96xf32> to vector<8x32xf32>
    %10 = vector.extract_strided_slice %7 {offsets = [0, 0], sizes = [8, 8], strides = [1, 1]} : vector<8x32xf32> to vector<8x8xf32>
    %11 = vector.extract_strided_slice %8 {offsets = [0, 0], sizes = [8, 8], strides = [1, 1]} : vector<8x32xf32> to vector<8x8xf32>
    %12 = vector.extract_strided_slice %9 {offsets = [0, 0], sizes = [8, 8], strides = [1, 1]} : vector<8x32xf32> to vector<8x8xf32>
    %cst_6 = arith.constant dense<0.000000e+00> : vector<8x8xf32>
    %13 = tpu.matmul %10, %11, %cst_6 {dimension_numbers = #tpu.dot_dimension_numbers<[1], [1], [0], [0], [0, 0, 1, 0], [], []>} : vector<8x8xf32>, vector<8x8xf32>, vector<8x8xf32> -> vector<8x8xf32>
    %cst_7 = arith.constant 0.353553385 : f32
    %14 = vector.broadcast %cst_7 : f32 to vector<8x8xf32>
    %15 = arith.mulf %13, %14 : vector<8x8xf32>
    %cst_8 = arith.constant dense<0xFF800000> : vector<8xf32>
    %16 = vector.multi_reduction <maximumf>, %15, %cst_8 [1] : vector<8x8xf32> to vector<8xf32>
    %17 = vector.shape_cast %16 : vector<8xf32> to vector<8x1xf32>
    %18 = vector.broadcast %17 : vector<8x1xf32> to vector<8x8xf32>
    %19 = arith.subf %15, %18 : vector<8x8xf32>
    %20 = math.exp %19 : vector<8x8xf32>
    %cst_9 = arith.constant dense<0.000000e+00> : vector<8xf32>
    %21 = vector.multi_reduction <add>, %20, %cst_9 [1] : vector<8x8xf32> to vector<8xf32>
    %22 = vector.shape_cast %21 : vector<8xf32> to vector<8x1xf32>
    %23 = vector.broadcast %22 : vector<8x1xf32> to vector<8x8xf32>
    %24 = arith.divf %20, %23 : vector<8x8xf32>
    %cst_10 = arith.constant dense<0.000000e+00> : vector<8x8xf32>
    %25 = tpu.matmul %24, %12, %cst_10 {dimension_numbers = #tpu.dot_dimension_numbers<[1], [0], [0], [1], [0, 0, 1, 1], [], []>} : vector<8x8xf32>, vector<8x8xf32>, vector<8x8xf32> -> vector<8x8xf32>
    %26 = vector.extract_strided_slice %7 {offsets = [0, 8], sizes = [8, 8], strides = [1, 1]} : vector<8x32xf32> to vector<8x8xf32>
    %27 = vector.extract_strided_slice %8 {offsets = [0, 8], sizes = [8, 8], strides = [1, 1]} : vector<8x32xf32> to vector<8x8xf32>
    %28 = vector.extract_strided_slice %9 {offsets = [0, 8], sizes = [8, 8], strides = [1, 1]} : vector<8x32xf32> to vector<8x8xf32>
    %cst_11 = arith.constant dense<0.000000e+00> : vector<8x8xf32>
    %29 = tpu.matmul %26, %27, %cst_11 {dimension_numbers = #tpu.dot_dimension_numbers<[1], [1], [0], [0], [0, 0, 1, 0], [], []>} : vector<8x8xf32>, vector<8x8xf32>, vector<8x8xf32> -> vector<8x8xf32>
    %cst_12 = arith.constant 0.353553385 : f32
    %30 = vector.broadcast %cst_12 : f32 to vector<8x8xf32>
    %31 = arith.mulf %29, %30 : vector<8x8xf32>
    %cst_13 = arith.constant dense<0xFF800000> : vector<8xf32>
    %32 = vector.multi_reduction <maximumf>, %31, %cst_13 [1] : vector<8x8xf32> to vector<8xf32>
    %33 = vector.shape_cast %32 : vector<8xf32> to vector<8x1xf32>
    %34 = vector.broadcast %33 : vector<8x1xf32> to vector<8x8xf32>
    %35 = arith.subf %31, %34 : vector<8x8xf32>
    %36 = math.exp %35 : vector<8x8xf32>
    %cst_14 = arith.constant dense<0.000000e+00> : vector<8xf32>
    %37 = vector.multi_reduction <add>, %36, %cst_14 [1] : vector<8x8xf32> to vector<8xf32>
    %38 = vector.shape_cast %37 : vector<8xf32> to vector<8x1xf32>
    %39 = vector.broadcast %38 : vector<8x1xf32> to vector<8x8xf32>
    %40 = arith.divf %36, %39 : vector<8x8xf32>
    %cst_15 = arith.constant dense<0.000000e+00> : vector<8x8xf32>
    %41 = tpu.matmul %40, %28, %cst_15 {dimension_numbers = #tpu.dot_dimension_numbers<[1], [0], [0], [1], [0, 0, 1, 1], [], []>} : vector<8x8xf32>, vector<8x8xf32>, vector<8x8xf32> -> vector<8x8xf32>
    %42 = vector.extract_strided_slice %7 {offsets = [0, 16], sizes = [8, 8], strides = [1, 1]} : vector<8x32xf32> to vector<8x8xf32>
    %43 = vector.extract_strided_slice %8 {offsets = [0, 16], sizes = [8, 8], strides = [1, 1]} : vector<8x32xf32> to vector<8x8xf32>
    %44 = vector.extract_strided_slice %9 {offsets = [0, 16], sizes = [8, 8], strides = [1, 1]} : vector<8x32xf32> to vector<8x8xf32>
    %cst_16 = arith.constant dense<0.000000e+00> : vector<8x8xf32>
    %45 = tpu.matmul %42, %43, %cst_16 {dimension_numbers = #tpu.dot_dimension_numbers<[1], [1], [0], [0], [0, 0, 1, 0], [], []>} : vector<8x8xf32>, vector<8x8xf32>, vector<8x8xf32> -> vector<8x8xf32>
    %cst_17 = arith.constant 0.353553385 : f32
    %46 = vector.broadcast %cst_17 : f32 to vector<8x8xf32>
    %47 = arith.mulf %45, %46 : vector<8x8xf32>
    %cst_18 = arith.constant dense<0xFF800000> : vector<8xf32>
    %48 = vector.multi_reduction <maximumf>, %47, %cst_18 [1] : vector<8x8xf32> to vector<8xf32>
    %49 = vector.shape_cast %48 : vector<8xf32> to vector<8x1xf32>
    %50 = vector.broadcast %49 : vector<8x1xf32> to vector<8x8xf32>
    %51 = arith.subf %47, %50 : vector<8x8xf32>
    %52 = math.exp %51 : vector<8x8xf32>
    %cst_19 = arith.constant dense<0.000000e+00> : vector<8xf32>
    %53 = vector.multi_reduction <add>, %52, %cst_19 [1] : vector<8x8xf32> to vector<8xf32>
    %54 = vector.shape_cast %53 : vector<8xf32> to vector<8x1xf32>
    %55 = vector.broadcast %54 : vector<8x1xf32> to vector<8x8xf32>
    %56 = arith.divf %52, %55 : vector<8x8xf32>
    %cst_20 = arith.constant dense<0.000000e+00> : vector<8x8xf32>
    %57 = tpu.matmul %56, %44, %cst_20 {dimension_numbers = #tpu.dot_dimension_numbers<[1], [0], [0], [1], [0, 0, 1, 1], [], []>} : vector<8x8xf32>, vector<8x8xf32>, vector<8x8xf32> -> vector<8x8xf32>
    %58 = vector.extract_strided_slice %7 {offsets = [0, 24], sizes = [8, 8], strides = [1, 1]} : vector<8x32xf32> to vector<8x8xf32>
    %59 = vector.extract_strided_slice %8 {offsets = [0, 24], sizes = [8, 8], strides = [1, 1]} : vector<8x32xf32> to vector<8x8xf32>
    %60 = vector.extract_strided_slice %9 {offsets = [0, 24], sizes = [8, 8], strides = [1, 1]} : vector<8x32xf32> to vector<8x8xf32>
    %cst_21 = arith.constant dense<0.000000e+00> : vector<8x8xf32>
    %61 = tpu.matmul %58, %59, %cst_21 {dimension_numbers = #tpu.dot_dimension_numbers<[1], [1], [0], [0], [0, 0, 1, 0], [], []>} : vector<8x8xf32>, vector<8x8xf32>, vector<8x8xf32> -> vector<8x8xf32>
    %cst_22 = arith.constant 0.353553385 : f32
    %62 = vector.broadcast %cst_22 : f32 to vector<8x8xf32>
    %63 = arith.mulf %61, %62 : vector<8x8xf32>
    %cst_23 = arith.constant dense<0xFF800000> : vector<8xf32>
    %64 = vector.multi_reduction <maximumf>, %63, %cst_23 [1] : vector<8x8xf32> to vector<8xf32>
    %65 = vector.shape_cast %64 : vector<8xf32> to vector<8x1xf32>
    %66 = vector.broadcast %65 : vector<8x1xf32> to vector<8x8xf32>
    %67 = arith.subf %63, %66 : vector<8x8xf32>
    %68 = math.exp %67 : vector<8x8xf32>
    %cst_24 = arith.constant dense<0.000000e+00> : vector<8xf32>
    %69 = vector.multi_reduction <add>, %68, %cst_24 [1] : vector<8x8xf32> to vector<8xf32>
    %70 = vector.shape_cast %69 : vector<8xf32> to vector<8x1xf32>
    %71 = vector.broadcast %70 : vector<8x1xf32> to vector<8x8xf32>
    %72 = arith.divf %68, %71 : vector<8x8xf32>
    %cst_25 = arith.constant dense<0.000000e+00> : vector<8x8xf32>
    %73 = tpu.matmul %72, %60, %cst_25 {dimension_numbers = #tpu.dot_dimension_numbers<[1], [0], [0], [1], [0, 0, 1, 1], [], []>} : vector<8x8xf32>, vector<8x8xf32>, vector<8x8xf32> -> vector<8x8xf32>
    %74 = tpu.concatenate %25, %41, %57, %73 in 1 : vector<8x8xf32>, vector<8x8xf32>, vector<8x8xf32>, vector<8x8xf32> -> vector<8x32xf32>
    %c0_26 = arith.constant 0 : index
    %c0_27 = arith.constant 0 : index
    %75 = vector.load %arg4[%c0_26, %c0_27] : memref<32x32xf32, #tpu.memory_space<vmem>>, vector<32x32xf32>
    %cst_28 = arith.constant dense<0.000000e+00> : vector<8x32xf32>
    %76 = tpu.matmul %74, %75, %cst_28 {dimension_numbers = #tpu.dot_dimension_numbers<[1], [0], [0], [1], [0, 0, 1, 1], [], []>} : vector<8x32xf32>, vector<32x32xf32>, vector<8x32xf32> -> vector<8x32xf32>
    %c0_29 = arith.constant 0 : index
    %c0_30 = arith.constant 0 : index
    %77 = vector.load %arg5[%c0_29, %c0_30] : memref<1x32xf32, #tpu.memory_space<vmem>>, vector<1x32xf32>
    %78 = vector.broadcast %77 : vector<1x32xf32> to vector<8x32xf32>
    %79 = arith.addf %76, %78 : vector<8x32xf32>
    %80 = arith.addf %1, %79 : vector<8x32xf32>
    %c0_31 = arith.constant 0 : index
    %c0_32 = arith.constant 0 : index
    %81 = vector.load %arg6[%c0_31, %c0_32] : memref<1x32xf32, #tpu.memory_space<vmem>>, vector<1x32xf32>
    %c0_33 = arith.constant 0 : index
    %c0_34 = arith.constant 0 : index
    %82 = vector.load %arg7[%c0_33, %c0_34] : memref<1x32xf32, #tpu.memory_space<vmem>>, vector<1x32xf32>
    %cst_35 = arith.constant dense<0.000000e+00> : vector<8xf32>
    %83 = vector.multi_reduction <add>, %80, %cst_35 [1] : vector<8x32xf32> to vector<8xf32>
    %84 = vector.shape_cast %83 : vector<8xf32> to vector<8x1xf32>
    %cst_36 = arith.constant 3.200000e+01 : f32
    %85 = vector.broadcast %cst_36 : f32 to vector<8x1xf32>
    %86 = arith.divf %84, %85 : vector<8x1xf32>
    %87 = vector.broadcast %86 : vector<8x1xf32> to vector<8x32xf32>
    %88 = arith.subf %80, %87 : vector<8x32xf32>
    %89 = arith.mulf %88, %88 : vector<8x32xf32>
    %cst_37 = arith.constant dense<0.000000e+00> : vector<8xf32>
    %90 = vector.multi_reduction <add>, %89, %cst_37 [1] : vector<8x32xf32> to vector<8xf32>
    %91 = vector.shape_cast %90 : vector<8xf32> to vector<8x1xf32>
    %cst_38 = arith.constant 3.200000e+01 : f32
    %92 = vector.broadcast %cst_38 : f32 to vector<8x1xf32>
    %93 = arith.divf %91, %92 : vector<8x1xf32>
    %94 = vector.broadcast %86 : vector<8x1xf32> to vector<8x32xf32>
    %95 = arith.subf %80, %94 : vector<8x32xf32>
    %cst_39 = arith.constant 9.99999974E-6 : f32
    %96 = vector.broadcast %cst_39 : f32 to vector<8x1xf32>
    %97 = arith.addf %93, %96 : vector<8x1xf32>
    %98 = math.rsqrt %97 : vector<8x1xf32>
    %99 = vector.broadcast %98 : vector<8x1xf32> to vector<8x32xf32>
    %100 = arith.mulf %95, %99 : vector<8x32xf32>
    %101 = vector.broadcast %81 : vector<1x32xf32> to vector<8x32xf32>
    %102 = arith.mulf %100, %101 : vector<8x32xf32>
    %103 = vector.broadcast %82 : vector<1x32xf32> to vector<8x32xf32>
    %104 = arith.addf %102, %103 : vector<8x32xf32>
    %c0_40 = arith.constant 0 : index
    %c0_41 = arith.constant 0 : index
    %105 = vector.load %arg8[%c0_40, %c0_41] : memref<32x64xf32, #tpu.memory_space<vmem>>, vector<32x64xf32>
    %cst_42 = arith.constant dense<0.000000e+00> : vector<8x64xf32>
    %106 = tpu.matmul %104, %105, %cst_42 {dimension_numbers = #tpu.dot_dimension_numbers<[1], [0], [0], [1], [0, 0, 1, 1], [], []>} : vector<8x32xf32>, vector<32x64xf32>, vector<8x64xf32> -> vector<8x64xf32>
    %c0_43 = arith.constant 0 : index
    %c0_44 = arith.constant 0 : index
    %107 = vector.load %arg9[%c0_43, %c0_44] : memref<1x64xf32, #tpu.memory_space<vmem>>, vector<1x64xf32>
    %108 = vector.broadcast %107 : vector<1x64xf32> to vector<8x64xf32>
    %109 = arith.addf %106, %108 : vector<8x64xf32>
    %cst_45 = arith.constant 0.000000e+00 : f32
    %110 = vector.broadcast %cst_45 : f32 to vector<8x64xf32>
    %111 = arith.maximumf %109, %110 : vector<8x64xf32>
    %c0_46 = arith.constant 0 : index
    %c0_47 = arith.constant 0 : index
    %112 = vector.load %arg10[%c0_46, %c0_47] : memref<64x32xf32, #tpu.memory_space<vmem>>, vector<64x32xf32>
    %cst_48 = arith.constant dense<0.000000e+00> : vector<8x32xf32>
    %113 = tpu.matmul %111, %112, %cst_48 {dimension_numbers = #tpu.dot_dimension_numbers<[1], [0], [0], [1], [0, 0, 1, 1], [], []>} : vector<8x64xf32>, vector<64x32xf32>, vector<8x32xf32> -> vector<8x32xf32>
    %c0_49 = arith.constant 0 : index
    %c0_50 = arith.constant 0 : index
    %114 = vector.load %arg11[%c0_49, %c0_50] : memref<1x32xf32, #tpu.memory_space<vmem>>, vector<1x32xf32>
    %115 = vector.broadcast %114 : vector<1x32xf32> to vector<8x32xf32>
    %116 = arith.addf %113, %115 : vector<8x32xf32>
    %117 = arith.addf %104, %116 : vector<8x32xf32>
    %c0_51 = arith.constant 0 : index
    %c0_52 = arith.constant 0 : index
    %118 = vector.load %arg12[%c0_51, %c0_52] : memref<1x32xf32, #tpu.memory_space<vmem>>, vector<1x32xf32>
    %c0_53 = arith.constant 0 : index
    %c0_54 = arith.constant 0 : index
    %119 = vector.load %arg13[%c0_53, %c0_54] : memref<1x32xf32, #tpu.memory_space<vmem>>, vector<1x32xf32>
    %cst_55 = arith.constant dense<0.000000e+00> : vector<8xf32>
    %120 = vector.multi_reduction <add>, %117, %cst_55 [1] : vector<8x32xf32> to vector<8xf32>
    %121 = vector.shape_cast %120 : vector<8xf32> to vector<8x1xf32>
    %cst_56 = arith.constant 3.200000e+01 : f32
    %122 = vector.broadcast %cst_56 : f32 to vector<8x1xf32>
    %123 = arith.divf %121, %122 : vector<8x1xf32>
    %124 = vector.broadcast %123 : vector<8x1xf32> to vector<8x32xf32>
    %125 = arith.subf %117, %124 : vector<8x32xf32>
    %126 = arith.mulf %125, %125 : vector<8x32xf32>
    %cst_57 = arith.constant dense<0.000000e+00> : vector<8xf32>
    %127 = vector.multi_reduction <add>, %126, %cst_57 [1] : vector<8x32xf32> to vector<8xf32>
    %128 = vector.shape_cast %127 : vector<8xf32> to vector<8x1xf32>
    %cst_58 = arith.constant 3.200000e+01 : f32
    %129 = vector.broadcast %cst_58 : f32 to vector<8x1xf32>
    %130 = arith.divf %128, %129 : vector<8x1xf32>
    %131 = vector.broadcast %123 : vector<8x1xf32> to vector<8x32xf32>
    %132 = arith.subf %117, %131 : vector<8x32xf32>
    %cst_59 = arith.constant 9.99999974E-6 : f32
    %133 = vector.broadcast %cst_59 : f32 to vector<8x1xf32>
    %134 = arith.addf %130, %133 : vector<8x1xf32>
    %135 = math.rsqrt %134 : vector<8x1xf32>
    %136 = vector.broadcast %135 : vector<8x1xf32> to vector<8x32xf32>
    %137 = arith.mulf %132, %136 : vector<8x32xf32>
    %138 = vector.broadcast %118 : vector<1x32xf32> to vector<8x32xf32>
    %139 = arith.mulf %137, %138 : vector<8x32xf32>
    %140 = vector.broadcast %119 : vector<1x32xf32> to vector<8x32xf32>
    %141 = arith.addf %139, %140 : vector<8x32xf32>
    %c0_60 = arith.constant 0 : index
    %c0_61 = arith.constant 0 : index
    %c0_62 = arith.constant 0 : index
    %142 = vector.load %arg14[%c0_60, %c0_61, %c0_62] : memref<1x8x32xf32, #tpu.memory_space<vmem>>, vector<1x8x32xf32>
    %143 = vector.shape_cast %142 : vector<1x8x32xf32> to vector<8x32xf32>
    %144 = vector.shape_cast %141 : vector<8x32xf32> to vector<1x8x32xf32>
    tpu.vector_store %arg14[%c0_60, %c0_61, %c0_62], %144 {strides = array<i32>} : memref<1x8x32xf32, #tpu.memory_space<vmem>>, vector<1x8x32xf32>,
    return
  }
  func.func @transform_0(%arg0: i32) -> (i32, i32, i32) {
    %c0_i32 = arith.constant 0 : i32
    %c0_i32_0 = arith.constant 0 : i32
    %c0_i32_1 = arith.constant 0 : i32
    return %arg0, %c0_i32, %c0_i32_0 : i32, i32, i32
  }
  func.func @transform_1(%arg0: i32) -> (i32, i32) {
    %c0_i32 = arith.constant 0 : i32
    %c0_i32_0 = arith.constant 0 : i32
    %c0_i32_1 = arith.constant 0 : i32
    return %c0_i32, %c0_i32_0 : i32, i32
  }
  func.func @transform_2(%arg0: i32) -> (i32, i32) {
    %c0_i32 = arith.constant 0 : i32
    %c0_i32_0 = arith.constant 0 : i32
    %c0_i32_1 = arith.constant 0 : i32
    return %c0_i32, %c0_i32_0 : i32, i32
  }
  func.func @transform_3(%arg0: i32) -> (i32, i32) {
    %c0_i32 = arith.constant 0 : i32
    %c0_i32_0 = arith.constant 0 : i32
    %c0_i32_1 = arith.constant 0 : i32
    return %c0_i32, %c0_i32_0 : i32, i32
  }
  func.func @transform_4(%arg0: i32) -> (i32, i32) {
    %c0_i32 = arith.constant 0 : i32
    %c0_i32_0 = arith.constant 0 : i32
    %c0_i32_1 = arith.constant 0 : i32
    return %c0_i32, %c0_i32_0 : i32, i32
  }
  func.func @transform_5(%arg0: i32) -> (i32, i32) {
    %c0_i32 = arith.constant 0 : i32
    %c0_i32_0 = arith.constant 0 : i32
    %c0_i32_1 = arith.constant 0 : i32
    return %c0_i32, %c0_i32_0 : i32, i32
  }
  func.func @transform_6(%arg0: i32) -> (i32, i32) {
    %c0_i32 = arith.constant 0 : i32
    %c0_i32_0 = arith.constant 0 : i32
    %c0_i32_1 = arith.constant 0 : i32
    return %c0_i32, %c0_i32_0 : i32, i32
  }
  func.func @transform_7(%arg0: i32) -> (i32, i32) {
    %c0_i32 = arith.constant 0 : i32
    %c0_i32_0 = arith.constant 0 : i32
    %c0_i32_1 = arith.constant 0 : i32
    return %c0_i32, %c0_i32_0 : i32, i32
  }
  func.func @transform_8(%arg0: i32) -> (i32, i32) {
    %c0_i32 = arith.constant 0 : i32
    %c0_i32_0 = arith.constant 0 : i32
    %c0_i32_1 = arith.constant 0 : i32
    return %c0_i32, %c0_i32_0 : i32, i32
  }
  func.func @transform_9(%arg0: i32) -> (i32, i32) {
    %c0_i32 = arith.constant 0 : i32
    %c0_i32_0 = arith.constant 0 : i32
    %c0_i32_1 = arith.constant 0 : i32
    return %c0_i32, %c0_i32_0 : i32, i32
  }
  func.func @transform_10(%arg0: i32) -> (i32, i32) {
    %c0_i32 = arith.constant 0 : i32
    %c0_i32_0 = arith.constant 0 : i32
    %c0_i32_1 = arith.constant 0 : i32
    return %c0_i32, %c0_i32_0 : i32, i32
  }
  func.func @transform_11(%arg0: i32) -> (i32, i32) {
    %c0_i32 = arith.constant 0 : i32
    %c0_i32_0 = arith.constant 0 : i32
    %c0_i32_1 = arith.constant 0 : i32
    return %c0_i32, %c0_i32_0 : i32, i32
  }
  func.func @transform_12(%arg0: i32) -> (i32, i32) {
    %c0_i32 = arith.constant 0 : i32
    %c0_i32_0 = arith.constant 0 : i32
    %c0_i32_1 = arith.constant 0 : i32
    return %c0_i32, %c0_i32_0 : i32, i32
  }
  func.func @transform_13(%arg0: i32) -> (i32, i32, i32) {
    %c0_i32 = arith.constant 0 : i32
    %c0_i32_0 = arith.constant 0 : i32
    %c0_i32_1 = arith.constant 0 : i32
    return %arg0, %c0_i32, %c0_i32_0 : i32, i32, i32
  }
}

</mosaic_0001>

<bundles_post_ra>
// kernel: tpu_custom_call.1
= control target key start
LH: loop header
LB: loop body
LE: loop exit
PB: predicated region body
PF: predicated region fallthrough
CT: control target
= control target key end

     0   :  { %s2715_s0 = inlined_call_operand.hbm [shape: f32[2,8,32], index: 0, kind: input, shape index: {}]   ;;  %s2716_s1 = inlined_call_operand.vmem [shape: f32[32,96], index: 1, kind: input, shape index: {}]   ;;  %s2717_s2 = inlined_call_operand.vmem [shape: f32[1,96], index: 2, kind: input, shape index: {}]   ;;  %s2718_s3 = inlined_call_operand.vmem [shape: f32[32,32], index: 3, kind: input, shape index: {}]   ;;  %s2719_s4 = inlined_call_operand.vmem [shape: f32[1,32], index: 4, kind: input, shape index: {}]   ;;  %s2720_s5 = inlined_call_operand.hbm [shape: f32[1,32], index: 5, kind: input, shape index: {}]   ;;  %s2721_s6 = inlined_call_operand.hbm [shape: f32[1,32], index: 6, kind: input, shape index: {}]   ;;  %s2722_s7 = inlined_call_operand.vmem [shape: f32[32,64], index: 7, kind: input, shape index: {}]   ;;  %s2723_s8 = inlined_call_operand.hbm [shape: f32[1,64], index: 8, kind: input, shape index: {}]   ;;  %s2724_s9 = inlined_call_operand.vmem [shape: f32[64,32], index: 9, kind: input, shape index: {}]   ;;  %s2725_s10 = inlined_call_operand.vmem [shape: f32[1,32], index: 10, kind: input, shape index: {}]   ;;  %s2726_s11 = inlined_call_operand.vmem [shape: f32[1,32], index: 11, kind: input, shape index: {}]   ;;  %s2727_s12 = inlined_call_operand.vmem [shape: f32[1,32], index: 12, kind: input, shape index: {}]   ;;  %s2728_s13 = inlined_call_operand.hbm [shape: f32[2,8,32], index: 13, kind: output, shape index: {}]  }
   0x1   :  { %2735 = sst [smem:[#allocation17_spill]] %s2715_s0 }
   0x2   :  { %2736 = sst [smem:[#allocation18_spill]] %s2716_s1 }
   0x3   :  { %2737 = sst [smem:[#allocation19_spill]] %s2726_s11 }
   0x4   :  { %2738 = sst [smem:[#allocation20_spill]] %s2727_s12 }
   0x5   :  { %2739 = sst [smem:[#allocation21_spill]] %s2728_s13 }
   0x6   :  { %18 = vsyncpa [#allocation3], 0 }
   0x7   :  { %20 = vsyncpa [#allocation3 + $0x1], 0 }
   0x8   :  { %21 = vsyncpa [#allocation6], 0 }
   0x9   :  { %22 = vsyncpa [#allocation9], 0 }
   0xa   :  { %23 = vsyncpa [#allocation4], 0 }
   0xb   :  { %25 = vsyncpa [#allocation4 + $0x1], 0  ;;  %s2294_s25 = smov 0   ;;  %s2296_s26 = smov 0  }
   0xc   :  { %s2298_s27 = smov 0   ;;  %s2300_s28 = smov 0  }
   0xd LB: > { %2740 = sst [smem:[#allocation15_spill]] %s2188_s25  ;;  %s2315_s29 = sadd.s32 4294967295, %s2200_s28   ;;  %s2200_s28 = sphi %s2300_s28, %s2768_s28   ;;  %s2196_s27 = sphi %s2298_s27, %s2767_s27   ;;  %s2192_s26 = sphi %s2296_s26, %s2766_s26   ;;  %s2188_s25 = sphi %s2294_s25, %s2765_s25  }
   0xe   : > { %s1694_s30 = sadd.s32 4294967294, %s2200_s28   ;;  %p51_p0 = scmp.ne.s32.totalorder %s2192_s26, %s2188_s25 }
   0xf   : > { %p2732_p1 = scmp.eq.s32.totalorder %s2315_s29, 0  ;;  %p333_p3 = scmp.eq.s32.totalorder %s1694_s30, 1 }
  0x10   : > { %p1695_p5 = scmp.ge.s32.totalorder %s2200_s28, 1  ;;  %p340_p7 = scmp.lt.s32.totalorder %s2200_s28, 3 }
  0x11   : > { %p2324_p4 = por %p2732_p1, %p51_p0  ;;  %p2329_p6 = por %p333_p3, %p51_p0 }
  0x12   : > { %p2334_p8 = pnand %p1695_p5, %p340_p7  ;;  %s2202_s17 = smov [#allocation5]  }
  0x13   : > { %s2741_s14 = scalar_select %p2324_p4, 1, 0 }
  0x14   : > { %s2742_s15 = scalar_select %p2329_p6, 1, 0 }
  0x15   : > { %s2744_s16 = scalar_select %p2334_p8, 1, 0 }
  0x16   : > { %2743 = sst [smem:[#allocation16_spill]] %s2742_s15  ;;  %s365_s18 = sshll.u32 %s2202_s17, 4  ;;  %s366_s18 = int_to_ptr.vmem [resolvable:$true] %s365_s18 }
  0x17   : > { %p1914_p10 = pneg %p2334_p8  ;;  %s2203_s19 = smov [#allocation7]  }
  0x18   : > { %s376_s20 = sshll.u32 %s2203_s19, 4  ;;  %s2204_s22 = smov [#allocation8]   ;;  %s2347_s20 = int_to_ptr.vmem [resolvable:$true] %s376_s20 }
  0x19   : > { %p2343_p11 = pnand %p1914_p10, %p2732_p1  ;;  %s390_s23 = sshll.u32 %s2204_s22, 4  ;;  %s2349_s23 = int_to_ptr.vmem [resolvable:$true] %s390_s23 }
  0x1a   : > { %s2012_s17 = scalar_lea.hbm %s2720_s5, 16 }
  0x1b   : > { %p2013_p12 = scmp.ne.s32.totalorder %s2720_s5, %s2012_s17  ;;  %p2359_p13 = pneg %p2343_p11 }
  0x1c   : > { %p2019_p5 = scmp.lt.u32.totalorder %s2012_s17, %s2720_s5 }
  0x1d   : > { %p2015_p0 = pnand %p2359_p13, %p2013_p12 }
  0x1f   : > { %p2016_p3 = pneg %p2015_p0 }
  0x21   : > { %p2021_p7 = pnand %p2019_p5, %p2016_p3 }
  0x23   : > { %2024 = shalt.err (!%p2021_p7)
}
  0x24   : > { %s2025_s24 = scalar_lea.vmem %s366_s18, 16  ;;  %s2032_s25 = scalar_lea.vmem %s366_s18, 32 }
  0x25   : > { %p2026_p10 = scmp.ne.s32.totalorder %s366_s18, %s2025_s24  ;;  %p2033_p2 = scmp.lt.s32.totalorder %s366_s18, %s366_s18 }
  0x26   : > { %p2034_p6 = scmp.lt.s32.totalorder %s2032_s25, %s2025_s24 }
  0x27   : > { %p2028_p9 = pnand %p2026_p10, %p2359_p13 }
  0x28   : > { %p2035_p4 = por %p2034_p6, %p2033_p2 }
  0x29   : > { %p2029_p1 = pneg %p2028_p9 }
  0x2b   : > { %p2036_p8 = pnand %p2035_p4, %p2029_p1 }
  0x2d   : > { %2039 = shalt.err (!%p2036_p8)
}
  0x2e   : > { %1917 = dma.hbm_to_vmem [thread:$0]  (!%p2343_p11), %s2720_s5, 16, %s366_s18, [#allocation6]  }
  0x2f   : > { %s2040_s22 = scalar_lea.hbm %s2721_s6, 16 }
  0x30   : > { %p2041_p9 = scmp.ne.s32.totalorder %s2721_s6, %s2040_s22  ;;  %p2047_p1 = scmp.lt.u32.totalorder %s2040_s22, %s2721_s6 }
  0x32   : > { %p2043_p12 = pnand %p2041_p9, %p2359_p13 }
  0x34   : > { %p2044_p2 = pneg %p2043_p12 }
  0x36   : > { %p2049_p4 = pnand %p2047_p1, %p2044_p2 }
  0x38   : > { %2052 = shalt.err (!%p2049_p4)
}
  0x39   : > { %s2053_s18 = scalar_lea.vmem %s2347_s20, 16  ;;  %s2060_s11 = scalar_lea.vmem %s2347_s20, 32 }
  0x3a   : > { %p2054_p6 = scmp.ne.s32.totalorder %s2347_s20, %s2053_s18  ;;  %p2061_p3 = scmp.lt.s32.totalorder %s2347_s20, %s2347_s20 }
  0x3b   : > { %p2062_p5 = scmp.lt.s32.totalorder %s2060_s11, %s2053_s18 }
  0x3c   : > { %p2056_p8 = pnand %p2054_p6, %p2359_p13 }
  0x3d   : > { %p2063_p7 = por %p2062_p5, %p2061_p3 }
  0x3e   : > { %p2057_p0 = pneg %p2056_p8 }
  0x40   : > { %p2064_p10 = pnand %p2063_p7, %p2057_p0 }
  0x42   : > { %2067 = shalt.err (!%p2064_p10)
}
  0x43   : > { %1920 = dma.hbm_to_vmem [thread:$0]  (!%p2343_p11), %s2721_s6, 16, %s2347_s20, [#allocation6]  }
  0x44   : > { %s2068_s17 = scalar_lea.hbm %s2723_s8, 16 }
  0x45   : > { %p2069_p9 = scmp.ne.s32.totalorder %s2723_s8, %s2068_s17  ;;  %p2075_p1 = scmp.lt.u32.totalorder %s2068_s17, %s2723_s8 }
  0x47   : > { %p2071_p12 = pnand %p2069_p9, %p2359_p13 }
  0x49   : > { %p2072_p2 = pneg %p2071_p12 }
  0x4b   : > { %p2077_p4 = pnand %p2075_p1, %p2072_p2 }
  0x4d   : > { %2080 = shalt.err (!%p2077_p4)
}
  0x4e   : > { %s2081_s20 = scalar_lea.vmem %s2349_s23, 16  ;;  %s2088_s11 = scalar_lea.vmem %s2349_s23, 32 }
  0x4f   : > { %p2082_p6 = scmp.ne.s32.totalorder %s2349_s23, %s2081_s20  ;;  %p2089_p3 = scmp.lt.s32.totalorder %s2349_s23, %s2349_s23 }
  0x50   : > { %p2090_p5 = scmp.lt.s32.totalorder %s2088_s11, %s2081_s20 }
  0x51   : > { %p2084_p8 = pnand %p2082_p6, %p2359_p13 }
  0x52   : > { %p2091_p7 = por %p2090_p5, %p2089_p3 }
  0x53   : > { %p2085_p0 = pneg %p2084_p8 }
  0x55   : > { %p2092_p10 = pnand %p2091_p7, %p2085_p0 }
  0x57   : > { %2095 = shalt.err (!%p2092_p10)
}
  0x58   : > { %1923 = dma.hbm_to_vmem [thread:$0]  (!%p2343_p11), %s2723_s8, 16, %s2349_s23, [#allocation9]  }
  0x59   : > { %s2424_s19 = sadd.s32 1, %s2200_s28   ;;  %s38_s30 = sadd.s32 1, %s2196_s27 }
  0x5a   : > { %s35_s21 = ssub.s32 %s2200_s28, %s2424_s19  ;;  %p45_p9 = scmp.ne.s32.totalorder %s2196_s27, %s2192_s26 }
  0x5b   : > { %p36_p13 = scmp.eq.s32.totalorder %s35_s21, 0  ;;  %p46_p12 = scmp.eq.s32.totalorder %s2200_s28, 0 }
  0x5c   : > { %p1935_p2 = scmp.lt.s32.totalorder %s2200_s28, 2  ;;  %p2747_p4 = scmp.eq.s32.totalorder %s2315_s29, 1 }
  0x5d   : > { %s2434_s13 = scalar_select %p36_p13, %s2196_s27, %s38_s30  }
  0x5e   : > { %p47_p1 = por %p46_p12, %p45_p9  ;;  %p2438_p6 = por %p2747_p4, %p45_p9 }
  0x5f   : > { %s413_s22 = sand.u32 1, %s2196_s27   ;;  %s1701_s24 = sshll.u32 %s2200_s28, 7 }
  0x60   : > { %s1700_s23 = sshll.u32 %s413_s22, 3  ;;  %s2749_s0 = sld [smem:[#allocation17_spill]] }
  0x61   : > { %s417_s11 = scalar_lea.vmem [#allocation2], %s1700_s23  ;;  %p2449_p11 = pnand %p1935_p2, %p47_p1 }
  0x62   : > { %s424_s12 = sshll.u32 %s417_s11, 4  ;;  %s414_s21 = scalar_lea.sflag [#allocation3], %s413_s22  ;;  %s2453_s12 = int_to_ptr.vmem [resolvable:$true] %s424_s12 }
  0x63   : > { %p2098_p0 = pneg %p2449_p11 }
  0x66   : > { %s2447_s20 = scalar_lea.hbm %s2749_s0, %s1701_s24  ;;  %s2101_s25 = scalar_lea.hbm %s2749_s0, 256 }
  0x67   : > { %s2096_s30 = scalar_lea.hbm %s2447_s20, 128  ;;  %p2102_p7 = scmp.lt.u32.totalorder %s2447_s20, %s2749_s0 }
  0x68   : > { %p2097_p8 = scmp.ne.s32.totalorder %s2447_s20, %s2096_s30  ;;  %p2103_p10 = scmp.lt.u32.totalorder %s2101_s25, %s2096_s30 }
  0x69   : > { %p2105_p9 = scmp.lt.u32.totalorder %s2096_s30, %s2447_s20 }
  0x6a   : > { %p2099_p3 = pnand %p2098_p0, %p2097_p8  ;;  %p2104_p13 = por %p2103_p10, %p2102_p7 }
  0x6c   : > { %p2100_p5 = pneg %p2099_p3  ;;  %p2106_p12 = por %p2105_p9, %p2104_p13 }
  0x6e   : > { %p2107_p2 = pnand %p2106_p12, %p2100_p5 }
  0x70   : > { %2110 = shalt.err (!%p2107_p2)
}
  0x71   : > { %s2111_s22 = scalar_lea.vmem %s2453_s12, 128  ;;  %s2205_s24 = smov [#allocation2]  }
  0x72   : > { %p2112_p1 = scmp.ne.s32.totalorder %s2453_s12, %s2111_s22  ;;  %s2116_s23 = sshll.u32 %s2205_s24, 4  ;;  %s2117_s23 = int_to_ptr.vmem [resolvable:$false] %s2116_s23 }
  0x73   : > { %s2118_s18 = scalar_lea.vmem %s2117_s23, 256  ;;  %p2119_p3 = scmp.lt.s32.totalorder %s2453_s12, %s2117_s23 }
  0x74   : > { %p2114_p4 = pnand %p2112_p1, %p2098_p0  ;;  %p2120_p7 = scmp.lt.s32.totalorder %s2118_s18, %s2111_s22 }
  0x76   : > { %p2115_p8 = pneg %p2114_p4  ;;  %p2121_p10 = por %p2120_p7, %p2119_p3 }
  0x78   : > { %p2122_p13 = pnand %p2121_p10, %p2115_p8 }
  0x7a   : > { %2125 = shalt.err (!%p2122_p13)
}
  0x7b   : > { %1927 = dma.hbm_to_vmem [thread:$0]  (!%p2449_p11), %s2447_s20, 128, %s2453_s12, %s414_s21  }
  0x7c   : > { %p2751_p5 = scmp.ne.s32.totalorder %s2744_s16, 0 }
  0x7d   : > { %s2483_s30 = sand.u32 (!%p2751_p5), 1, %s2192_s26   ;;  %p2752_p0 = scmp.ne.s32.totalorder (!%p2751_p5), %s2741_s14, 0 }
  0x7e   : > { %433 = sbr.rel (%p2751_p5) target bundleno = 2690 (0xa82), region = 72  ;;  %s1703_s25 = sshll.u32 (!%p2751_p5), %s2483_s30, 3 }
  0x7f   : > { %s436_s11 = scalar_lea.sflag (!%p2751_p5), [#allocation3], %s2483_s30  ;;  %s439_s22 = scalar_lea.vmem (!%p2751_p5), [#allocation2], %s1703_s25 }
  0x85   : > { %2171 = dma.done.wait (%p2752_p0), %s436_s11, 128  }
  0x86   : > { %2173 = vsyncadd (%p2752_p0), %s436_s11, 4294967168  ;;  %p2753_p11 = scmp.eq.s32.totalorder %s2315_s29, 0 }
  0x88   : > { %2175 = dma.done.wait (%p2753_p11), [#allocation6], 32   ;;  %p2754_p9 = pmov %p2753_p11 }
  0x8a   : > { %2177 = vsyncadd (%p2754_p9), [#allocation6], 4294967264  ;;  %p2755_p12 = pmov %p2754_p9 }
  0x8b   : > { %p2756_p2 = pmov %p2754_p9 }
  0x8c   : > { %2179 = dma.done.wait (%p2755_p12), [#allocation9], 16  }
  0x8d   : > { %2181 = vsyncadd (%p2756_p2), [#allocation9], 4294967280  ;;  %v2206_v0 = vmov 0.0|0.0   ;;  %vm2207_vm0 = vmmov 0   ;;  %v2208_v1 = vmov 0.0   ;;  %s2757_s1 = sld [smem:[#allocation18_spill]] }
  0x8e   : > { %1868 = vmatprep.subr.bf16.mxu1 %v2206_v0  ;;  %1784 = vmatprep.mubr.msk.f32.mxu1 %vm2207_vm0, %v2208_v1  ;;  %v2520_v8 = vld [vmem:[%s439_s22] sm:$0xff]  ;;  %vm506_vm1 = vcmask 261120   ;;  %s2209_s14 = smov 120   ;;  %s2210_s22 = smov 96   ;;  %vm583_vm2 = vcmask 64512   ;;  %vm1257_vm3 = vcmask 130048  }
  0x8f   : > { %1797 = vmatprep.subr.mxu0 %v2208_v1  ;;  %1799 = vmatprep.mubr.msk.f32.mxu0 %vm2207_vm0, %v2208_v1  ;;  %v1708_v9 = vld [vmem:[%s2717_s2] ss:$0 sm:$0xff]  ;;  %s2211_s16 = smov 80   ;;  %s2212_s20 = smov 88   ;;  %vm1259_vm4 = vcmask 195584   ;;  %vm1476_vm5 = vcmask 523264  }
  0x90   : > { %s2213_s12 = smov 72   ;;  %s2214_s15 = smov 112  }
  0x91   : > { %s2215_s21 = smov 104   ;;  %s2216_s24 = smov 56  }
  0x92   : > { %s2217_s23 = smov 64   ;;  %s2218_s18 = smov 48  }
  0x93   : > { %v495_v2 = vld [vmem:[%s2757_s1] sm:$0xff]  ;;  %v496_v3 = vld [vmem:[%s2757_s1 + $0x8] sm:$0xff]  ;;  %v497_v4 = vld [vmem:[%s2757_s1 + $0x10] sm:$0xff]  ;;  %s2219_s11 = smov 40   ;;  %s2760_s0 = sld [smem:[#allocation21_spill]] }
  0x94   : > { %v1869_v5 = vpack.c.bf16 %v496_v3, %v495_v2  ;;  %v498_v6 = vld [vmem:[%s2757_s1 + $0x18] sm:$0xff] }
  0x95   : > { %v1872_v7 = vpack.c.bf16 %v498_v6, %v497_v4 }
  0x96   : > { %1870 = vmatpush3.bf16.msra.mxu1 %v1869_v5 }
  0x97   : > { %1871 = vmatprep.subr.bf16.mxu1 %v2206_v0 }
  0x9a   : > { %1873 = vmatpush3.bf16.msra.mxu1 %v1872_v7 }
  0x9b   : > { %1787 = vmatprep.subr.mxu1 %v2208_v1 }
  0x9d   : > { %1785 = vmatmul.mubr.msk.f32.vlgmr.msra.gmra.mrb[0].mxu1 %vm506_vm1, %v2520_v8 }
  0x9e   : > { %1789 = vmatprep.mubr.msk.f32.mxu1 %vm2207_vm0, %v2208_v1 }
 0x170   : > { %v576_v10 = vpop.f32.mrb[0].mxu1 }
 0x171   : > { %v2530_v11 = vadd.f32 %v1708_v9, %v576_v10  ;;  %v1786_v12 = vpop.f32.mrb[1].mxu1 }
 0x172   : > { %v1262_v12 = vld [vmem:[%s2718_s3 + $0x8] sm:$0xff] }
 0x173   : > { %746 = vrot.lane.b32.xlu1 %v2530_v11, %s2209_s14  ;;  %581 = vrot.lane.b32.xlu0 %v2530_v11, %s2210_s22  ;;  %s2759_s14 = sld [smem:[#allocation20_spill]]  ;;  %s1733_s22 = sshll.u32 %s2315_s29, 7 }
 0x174   : > { %s2670_s1 = scalar_lea.hbm %s2760_s0, %s1733_s22  ;;  %s2223_s29 = smov [#allocation10]  }
 0x177   : > { %914 = vrot.lane.b32.xlu1 %v2530_v11, %s2211_s16  ;;  %748 = vrot.lane.b32.xlu0 %v2530_v11, %s2212_s20  ;;  %s493_s16 = scalar_lea.vmem [#allocation10], %s1703_s25  ;;  %s2130_s25 = sshll.u32 %s2223_s29, 4  ;;  %s2131_s25 = int_to_ptr.vmem [resolvable:$false] %s2130_s25 }
 0x178   : > { %s1595_s20 = sshll.u32 %s493_s16, 4  ;;  %s2672_s20 = int_to_ptr.vmem [resolvable:$true] %s1595_s20 }
 0x179   : > { %p2133_p3 = scmp.lt.s32.totalorder %s2672_s20, %s2131_s25 }
 0x17b   : > { %1080 = vrot.lane.b32.xlu1 %v2530_v11, %s2213_s12  ;;  %912 = vrot.lane.b32.xlu0 %v2530_v11, %s2214_s15  ;;  %s2220_s12 = smov 8  }
 0x17f   : > { %1078 = vrot.lane.b32.xlu0 %v2530_v11, %s2215_s21  ;;  %s1582_s21 = scalar_lea.sflag [#allocation4], %s2483_s30 }
 0x1e5   : > { %v747_v13 = vpop.permute.xlu1 %746  ;;  %v582_v14 = vpop.permute.xlu0 %581 }
 0x1e6   : > { %1788 = vmatpush3.xpose.msk.msra.mxu1 %vm583_vm2, %v582_v14 }
 0x1e7   : > { %1792 = vmatprep.subr.mxu1 %v2208_v1 }
 0x1e9   : > { %1790 = vmatmul.mubr.msk.f32.vlgmr.msra.gmra.mrb[2].mxu1 %vm583_vm2, %v2530_v11  ;;  %v749_v15 = vpop.permute.xlu0 %748  ;;  %v915_v16 = vpop.permute.xlu1 %914 }
 0x1ea   : > { %1798 = vmatpush3.xpose.msk.msra.mxu0 %vm583_vm2, %v749_v15  ;;  %1794 = vmatprep.mubr.msk.f32.mxu1 %vm2207_vm0, %v2208_v1 }
 0x1eb   : > { %1807 = vmatprep.subr.mxu0 %v2208_v1 }
 0x1ed   : > { %1800 = vmatmul.mubr.msk.f32.vlgmr.msra.gmra.mrb[0].mxu0 %vm583_vm2, %v747_v13  ;;  %v913_v17 = vpop.permute.xlu0 %912  ;;  %v1081_v18 = vpop.permute.xlu1 %1080 }
 0x1ee   : > { %1808 = vmatpush3.xpose.msk.msra.mxu0 %vm583_vm2, %v915_v16  ;;  %1809 = vmatprep.mubr.msk.f32.mxu0 %vm2207_vm0, %v2208_v1 }
 0x1ef   : > { %1817 = vmatprep.subr.mxu0 %v2208_v1 }
 0x1f1   : > { %1810 = vmatmul.mubr.msk.f32.vlgmr.msra.gmra.mrb[2].mxu0 %vm583_vm2, %v913_v17  ;;  %v1079_v19 = vpop.permute.xlu0 %1078 }
 0x1f2   : > { %1818 = vmatpush3.xpose.msk.msra.mxu0 %vm583_vm2, %v1081_v18  ;;  %1819 = vmatprep.mubr.msk.f32.mxu0 %vm2207_vm0, %v2208_v1  ;;  %v1263_v18 = vld [vmem:[%s2718_s3 + $0x10] sm:$0xff] }
 0x1f3   : > { %1874 = vmatprep.subr.bf16.mxu0 %v2206_v0 }
 0x1f5   : > { %1820 = vmatmul.mubr.msk.f32.vlgmr.msra.gmra.mrb[4].mxu0 %vm583_vm2, %v1079_v19  ;;  %v1264_v19 = vld [vmem:[%s2718_s3 + $0x18] sm:$0xff] }
 0x1f6   : > { %1835 = vmatprep.mubr.msk.f32.mxu0 %vm2207_vm0, %v2208_v1 }
 0x2bc   : > { %v654_v20 = vpop.f32.mrb[2].mxu1 }
 0x2bd   : > { %v658_v21 = vmul.f32 0.35355338, %v654_v20  ;;  %v1791_v22 = vpop.f32.mrb[3].mxu1  ;;  %v1878_v20 = vpack.c.bf16 %v1264_v19, %v1263_v18 }
 0x2bf   : > { %v659_v23 = vsel %vm583_vm2, %v658_v21, -inf }
 0x2c0   : > { %v820_v24 = vpop.f32.mrb[0].mxu0  ;;  %660 = vmax.xlane.f32.xlu1 %v659_v23 }
 0x2c1   : > { %v824_v25 = vmul.f32 0.35355338, %v820_v24  ;;  %v1801_v26 = vpop.f32.mrb[1].mxu0 }
 0x2c3   : > { %v825_v27 = vsel %vm583_vm2, %v824_v25, -inf }
 0x2c4   : > { %826 = vmax.xlane.f32.xlu0 %v825_v27  ;;  %v986_v28 = vpop.f32.mrb[2].mxu0 }
 0x2c5   : > { %v990_v29 = vmul.f32 0.35355338, %v986_v28  ;;  %v1811_v30 = vpop.f32.mrb[3].mxu0 }
 0x2c7   : > { %v991_v31 = vsel %vm583_vm2, %v990_v29, -inf }
 0x2c8   : > { %992 = vmax.xlane.f32.xlu0 %v991_v31  ;;  %v1152_v32 = vpop.f32.mrb[4].mxu0  ;;  %v1722_v31 = vld [vmem:[%s2719_s4] ss:$0 sm:$0xff] }
 0x2c9   : > { %v1156_v33 = vmul.f32 0.35355338, %v1152_v32  ;;  %v1821_v34 = vpop.f32.mrb[5].mxu0 }
 0x2cb   : > { %v1157_v35 = vsel %vm583_vm2, %v1156_v33, -inf }
 0x2cc   : > { %1158 = vmax.xlane.f32.xlu1 %v1157_v35 }
 0x2dd   : > { %836 = vrot.lane.b32.xlu1 %v2530_v11, %s2216_s24  ;;  %s2126_s24 = scalar_lea.vmem %s2672_s20, 128 }
 0x2de   : > { %p2127_p1 = scmp.ne.s32.totalorder %s2672_s20, %s2126_s24 }
 0x2e0   : > { %p2128_p4 = pnand %p2127_p1, %p2438_p6 }
 0x2e2   : > { %p2129_p8 = pneg %p2128_p4 }
 0x34d   : > { %v661_v36 = vpop.xlane.xlu1 %660 }
 0x34e   : > { %v662_v37 = vsub.f32 %v658_v21, %v661_v36 }
 0x350   : > { %v663_v38 = vmul.f32 1.442695, %v662_v37 }
 0x351   : > { %v827_v39 = vpop.xlane.xlu0 %826 }
 0x352   : > { %1992 = vpow2.f32 %v663_v38  ;;  %v828_v40 = vsub.f32 %v824_v25, %v827_v39 }
 0x354   : > { %v829_v41 = vmul.f32 1.442695, %v828_v40 }
 0x355   : > { %v993_v51 = vpop.xlane.xlu0 %992 }
 0x356   : > { %1994 = vpow2.f32 %v829_v41  ;;  %v994_v52 = vsub.f32 %v990_v29, %v993_v51 }
 0x358   : > { %v995_v53 = vmul.f32 1.442695, %v994_v52  ;;  %v1465_v52 = vld [vmem:[%s2724_s9 + $0x20] sm:$0xff] }
 0x359   : > { %v1159_v42 = vpop.xlane.xlu1 %1158 }
 0x35a   : > { %v1160_v43 = vsub.f32 %v1156_v33, %v1159_v42  ;;  %v1377_v42 = vld [vmem:[%s2722_s7 + $0x8] sm:$0xff] }
 0x35c   : > { %v1993_v44 = vpop.eup %1992  ;;  %v1161_v45 = vmul.f32 1.442695, %v1160_v43 }
 0x35d   : > { %v665_v46 = vsel %vm583_vm2, %v1993_v44, 0.0  ;;  %v837_v56 = vpop.permute.xlu1 %836 }
 0x35e   : > { %1996 = vpow2.f32 %v1161_v45  ;;  %666 = vadd.xlane.f32.xlu0 %v665_v46  ;;  %v1461_v46 = vld [vmem:[%s2724_s9] sm:$0xff] }
 0x35f   : > { %1998 = vpow2.f32 %v995_v53  ;;  %v1466_v53 = vld [vmem:[%s2724_s9 + $0x28] sm:$0xff] }
 0x360   : > { %v1995_v47 = vpop.eup %1994 }
 0x361   : > { %v831_v48 = vsel %vm583_vm2, %v1995_v47, 0.0 }
 0x362   : > { %832 = vadd.xlane.f32.xlu1 %v831_v48  ;;  %v1463_v48 = vld [vmem:[%s2724_s9 + $0x10] sm:$0xff] }
 0x368   : > { %v1997_v49 = vpop.eup %1996 }
 0x369   : > { %v1163_v50 = vsel %vm583_vm2, %v1997_v49, 0.0  ;;  %v1999_v54 = vpop.eup %1998 }
 0x36a   : > { %1164 = vadd.xlane.f32.xlu1 %v1163_v50  ;;  %v997_v55 = vsel %vm583_vm2, %v1999_v54, 0.0  ;;  %v1464_v50 = vld [vmem:[%s2724_s9 + $0x18] sm:$0xff] }
 0x36b   : > { %v1890_v51 = vpack.c.bf16 %v1464_v50, %v1463_v48 }
 0x374   : > { %670 = vrot.lane.b32.xlu0 %v2530_v11, %s2217_s23  ;;  %s2758_s23 = sld [smem:[#allocation19_spill]] }
 0x37b   : > { %1002 = vrot.lane.b32.xlu1 %v2530_v11, %s2218_s18  ;;  %s2221_s18 = smov 16  }
 0x393   : > { %998 = vadd.xlane.f32.xlu0 %v997_v55 }
 0x3a9   : > { %1168 = vrot.lane.b32.xlu0 %v2530_v11, %s2219_s11  ;;  %v1261_v11 = vld [vmem:[%s2718_s3] sm:$0xff]  ;;  %s2222_s11 = smov 24  }
 0x3aa   : > { %v1875_v13 = vpack.c.bf16 %v1262_v12, %v1261_v11 }
 0x3ac   : > { %1876 = vmatpush3.bf16.msra.mxu0 %v1875_v13 }
 0x3ad   : > { %1877 = vmatprep.subr.bf16.mxu0 %v2206_v0 }
 0x3b0   : > { %1879 = vmatpush3.bf16.msra.mxu0 %v1878_v20 }
 0x3b1   : > { %1886 = vmatprep.subr.bf16.mxu0 %v2206_v0 }
 0x3eb   : > { %v667_v57 = vpop.xlane.xlu0 %666 }
 0x3ec   : > { %2000 = vrcp.f32 %v667_v57 }
 0x3ef   : > { %v671_v58 = vpop.permute.xlu0 %670  ;;  %v833_v59 = vpop.xlane.xlu1 %832 }
 0x3f0   : > { %2002 = vrcp.f32 %v833_v59  ;;  %1793 = vmatpush3.msra.mxu1 %v671_v58  ;;  %v1724_v59 = vld [vmem:[#allocation5] ss:$0 sm:$0xff] }
 0x3f1   : > { %1802 = vmatprep.subr.mxu1 %v2208_v1 }
 0x3f6   : > { %v2001_v60 = vpop.eup %2000 }
 0x3f7   : > { %v669_v61 = vmul.f32 %v2001_v60, %v1993_v44  ;;  %v1165_v62 = vpop.xlane.xlu1 %1164  ;;  %v1379_v44 = vld [vmem:[%s2722_s7 + $0x18] sm:$0xff] }
 0x3f9   : > { %1795 = vmatmul.mubr.msk.f32.vlgmr.msra.gmra.mrb[4].mxu1 %vm583_vm2, %v669_v61  ;;  %v1725_v61 = vld [vmem:[#allocation7] ss:$0 sm:$0xff] }
 0x3fa   : > { %v2003_v63 = vpop.eup %2002  ;;  %1803 = vmatpush3.msra.mxu1 %v837_v56  ;;  %1804 = vmatprep.mubr.msk.f32.mxu1 %vm2207_vm0, %v2208_v1 }
 0x3fb   : > { %v835_v2 = vmul.f32 %v2003_v63, %v1995_v47  ;;  %v1003_v3 = vpop.permute.xlu1 %1002  ;;  %1812 = vmatprep.subr.mxu1 %v2208_v1  ;;  %v1462_v47 = vld [vmem:[%s2724_s9 + $0x8] sm:$0xff] }
 0x3fd   : > { %1805 = vmatmul.mubr.msk.f32.vlgmr.msra.gmra.mrb[6].mxu1 %vm583_vm2, %v835_v2  ;;  %v1467_v2 = vld [vmem:[%s2724_s9 + $0x30] sm:$0xff] }
 0x3fe   : > { %1813 = vmatpush3.msra.mxu1 %v1003_v3  ;;  %1814 = vmatprep.mubr.msk.f32.mxu1 %vm2207_vm0, %v2208_v1 }
 0x3ff   : > { %1822 = vmatprep.subr.mxu1 %v2208_v1 }
 0x420   : > { %v999_v4 = vpop.xlane.xlu0 %998 }
 0x421   : > { %2004 = vrcp.f32 %v999_v4  ;;  %v1726_v4 = vld [vmem:[#allocation8] ss:$0 sm:$0xff] }
 0x422   : > { %2006 = vrcp.f32 %v1165_v62 }
 0x424   : > { %v1169_v9 = vpop.permute.xlu0 %1168 }
 0x42b   : > { %v2005_v5 = vpop.eup %2004 }
 0x42c   : > { %v1001_v6 = vmul.f32 %v2005_v5, %v1999_v54  ;;  %v2007_v7 = vpop.eup %2006  ;;  %v1893_v54 = vpack.c.bf16 %v1466_v53, %v1465_v52 }
 0x42d   : > { %v1167_v10 = vmul.f32 %v2007_v7, %v1997_v49  ;;  %v1887_v49 = vpack.c.bf16 %v1462_v47, %v1461_v46 }
 0x42e   : > { %1815 = vmatmul.mubr.msk.f32.vlgmr.msra.gmra.mrb[8].mxu1 %vm583_vm2, %v1001_v6 }
 0x42f   : > { %1823 = vmatpush3.msra.mxu1 %v1169_v9  ;;  %1824 = vmatprep.mubr.msk.f32.mxu1 %vm2207_vm0, %v2208_v1 }
 0x430   : > { %1880 = vmatprep.subr.bf16.mxu1 %v2206_v0 }
 0x432   : > { %1825 = vmatmul.mubr.msk.f32.vlgmr.msra.gmra.mrb[10].mxu1 %vm583_vm2, %v1167_v10  ;;  %v1728_v10 = vld [vmem:[%s2725_s10] ss:$0 sm:$0xff] }
 0x433   : > { %1846 = vmatprep.mubr.msk.f32.mxu1 %vm2207_vm0, %v2208_v1 }
 0x4cc   : > { %v742_v14 = vpop.f32.mrb[4].mxu1 }
 0x4cd   : > { %v1796_v15 = vpop.f32.mrb[5].mxu1 }
 0x4d0   : > { %v908_v16 = vpop.f32.mrb[6].mxu1 }
 0x4d1   : > { %1245 = vrot.lane.b32.xlu1 %v908_v16, %s2220_s12  ;;  %v1806_v17 = vpop.f32.mrb[7].mxu1 }
 0x501   : > { %v1074_v21 = vpop.f32.mrb[8].mxu1 }
 0x502   : > { %1249 = vrot.lane.b32.xlu0 %v1074_v21, %s2221_s18  ;;  %v1816_v22 = vpop.f32.mrb[9].mxu1 }
 0x505   : > { %v1240_v23 = vpop.f32.mrb[10].mxu1 }
 0x506   : > { %1253 = vrot.lane.b32.xlu1 %v1240_v23, %s2222_s11  ;;  %v1826_v24 = vpop.f32.mrb[11].mxu1 }
 0x543   : > { %v1246_v25 = vpop.permute.xlu1 %1245 }
 0x544   : > { %v1256_v27 = vsel %vm583_vm2, %v742_v14, %v1246_v25  ;;  %v1730_v25 = vld [vmem:[%s2758_s23] ss:$0 sm:$0xff]  ;;  %s2132_s23 = scalar_lea.vmem %s2131_s25, 256 }
 0x545   : > { %p2134_p7 = scmp.lt.s32.totalorder %s2132_s23, %s2126_s24 }
 0x547   : > { %p2135_p10 = por %p2134_p7, %p2133_p3 }
 0x549   : > { %p2136_p13 = pnand %p2135_p10, %p2129_p8 }
 0x574   : > { %v1250_v26 = vpop.permute.xlu0 %1249 }
 0x575   : > { %v1258_v28 = vsel %vm1257_vm3, %v1256_v27, %v1250_v26  ;;  %v1731_v27 = vld [vmem:[%s2759_s14] ss:$0 sm:$0xff] }
 0x578   : > { %v1254_v29 = vpop.permute.xlu1 %1253 }
 0x579   : > { %v1260_v30 = vsel %vm1259_vm4, %v1258_v28, %v1254_v29 }
 0x57a   : > { %1836 = vmatmul.mubr.msk.f32.vlgmr.msra.gmra.mrb[6].mxu0 %vm506_vm1, %v1260_v30 }
 0x57b   : > { %1865 = vmatprep.mubr.msk.f32.mxu0 %vm2207_vm0, %v2208_v1  ;;  %v1376_v1 = vld [vmem:[%s2722_s7] sm:$0xff]  ;;  %1888 = vmatpush3.bf16.msra.mxu0 %v1887_v49 }
 0x57c   : > { %v1881_v43 = vpack.c.bf16 %v1377_v42, %v1376_v1  ;;  %1889 = vmatprep.subr.bf16.mxu0 %v2206_v0 }
 0x57e   : > { %1882 = vmatpush3.bf16.msra.mxu1 %v1881_v43 }
 0x57f   : > { %1883 = vmatprep.subr.bf16.mxu1 %v2206_v0  ;;  %1891 = vmatpush3.bf16.msra.mxu0 %v1890_v51 }
 0x580   : > { %1892 = vmatprep.subr.bf16.mxu0 %v2206_v0 }
 0x583   : > { %1894 = vmatpush3.bf16.msra.mxu0 %v1893_v54 }
 0x584   : > { %1895 = vmatprep.subr.bf16.mxu0 %v2206_v0  ;;  %v1468_v0 = vld [vmem:[%s2724_s9 + $0x38] sm:$0xff] }
 0x585   : > { %v1896_v3 = vpack.c.bf16 %v1468_v0, %v1467_v2 }
 0x587   : > { %1897 = vmatpush3.bf16.msra.mxu0 %v1896_v3 }
 0x64d   : > { %v1341_v32 = vpop.f32.mrb[6].mxu0 }
 0x64e   : > { %v1342_v33 = vadd.f32 %v1722_v31, %v1341_v32  ;;  %v1837_v34 = vpop.f32.mrb[7].mxu0 }
 0x650   : > { %v1345_v35 = vadd.f32 %v1342_v33, %v2520_v8  ;;  %v1378_v8 = vld [vmem:[%s2722_s7 + $0x10] sm:$0xff] }
 0x651   : > { %v1884_v45 = vpack.c.bf16 %v1379_v44, %v1378_v8 }
 0x652   : > { %v1348_v36 = vsel %vm506_vm1, %v1345_v35, 0.0 }
 0x653   : > { %1349 = vadd.xlane.f32.xlu0 %v1348_v36  ;;  %1885 = vmatpush3.bf16.msra.mxu1 %v1884_v45 }
 0x6e0   : > { %v1350_v37 = vpop.xlane.xlu0 %1349 }
 0x6e1   : > { %v1352_v38 = vmul.f32 0.03125, %v1350_v37 }
 0x6e3   : > { %v1353_v39 = vsub.f32 %v1345_v35, %v1352_v38 }
 0x6e5   : > { %v1354_v40 = vmul.f32 %v1353_v39, %v1353_v39 }
 0x6e7   : > { %v1355_v41 = vsel %vm506_vm1, %v1354_v40, 0.0 }
 0x6e8   : > { %1356 = vadd.xlane.f32.xlu1 %v1355_v41 }
 0x775   : > { %v1357_v55 = vpop.xlane.xlu1 %1356 }
 0x776   : > { %v1358_v56 = vmul.f32 0.03125, %v1357_v55 }
 0x778   : > { %v1359_v57 = vadd.f32 1e-05, %v1358_v56 }
 0x77a   : > { %2008 = vrsqrt.f32 %v1359_v57 }
 0x784   : > { %v2009_v58 = vpop.eup %2008 }
 0x785   : > { %v1361_v60 = vmul.f32 %v2009_v58, %v1353_v39 }
 0x787   : > { %v1368_v62 = vmul.f32 %v1724_v59, %v1361_v60 }
 0x789   : > { %v1375_v63 = vadd.f32 %v1725_v61, %v1368_v62 }
 0x78b   : > { %1847 = vmatmul.mubr.msk.f32.vlgmr.msra.gmra.mrb[12].mxu1 %vm506_vm1, %v1375_v63 }
 0x85e   : > { %v1456_v5 = vpop.f32.mrb[12].mxu1 }
 0x85f   : > { %v1457_v6 = vadd.f32 %v1726_v4, %v1456_v5  ;;  %v1848_v7 = vpop.f32.mrb[13].mxu1 }
 0x861   : > { %v1460_v9 = vmax.f32 %v1457_v6, 0.0 }
 0x863   : > { %1866 = vmatmul.mubr.msk.f32.vlgmr.msra.gmra.mrb[8].mxu0 %vm1476_vm5, %v1460_v9 }
 0x936   : > { %v1546_v11 = vpop.f32.mrb[8].mxu0 }
 0x937   : > { %v1547_v12 = vadd.f32 %v1728_v10, %v1546_v11  ;;  %v1867_v13 = vpop.f32.mrb[9].mxu0 }
 0x939   : > { %v1550_v14 = vadd.f32 %v1547_v12, %v1375_v63 }
 0x93b   : > { %v1553_v15 = vsel %vm506_vm1, %v1550_v14, 0.0 }
 0x93c   : > { %1554 = vadd.xlane.f32.xlu0 %v1553_v15 }
 0x9c9   : > { %v1555_v16 = vpop.xlane.xlu0 %1554 }
 0x9ca   : > { %v1556_v17 = vmul.f32 0.03125, %v1555_v16 }
 0x9cc   : > { %v1557_v18 = vsub.f32 %v1550_v14, %v1556_v17 }
 0x9ce   : > { %v1558_v19 = vmul.f32 %v1557_v18, %v1557_v18 }
 0x9d0   : > { %v1559_v20 = vsel %vm506_vm1, %v1558_v19, 0.0 }
 0x9d1   : > { %1560 = vadd.xlane.f32.xlu0 %v1559_v20 }
 0xa5e   : > { %v1561_v21 = vpop.xlane.xlu0 %1560 }
 0xa5f   : > { %v1562_v22 = vmul.f32 0.03125, %v1561_v21 }
 0xa61   : > { %v1563_v23 = vadd.f32 1e-05, %v1562_v22 }
 0xa63   : > { %2010 = vrsqrt.f32 %v1563_v23 }
 0xa6d   : > { %v2011_v24 = vpop.eup %2010 }
 0xa6e   : > { %v1565_v26 = vmul.f32 %v2011_v24, %v1557_v18 }
 0xa70   : > { %v1572_v28 = vmul.f32 %v1730_v25, %v1565_v26 }
 0xa72   : > { %v1579_v29 = vadd.f32 %v1731_v27, %v1572_v28 }
 0xa74   : > { %1580 = vst.msk [vmem:[%s493_s16] sm:$0xff] %vm506_vm1, %v1579_v29 }
 0xa75   : > { %2139 = shalt.err (!%p2136_p13)
}
 0xa76   : > { %s2140_s30 = scalar_lea.hbm %s2670_s1, 128  ;;  %s2144_s14 = scalar_lea.hbm %s2760_s0, 256 }
 0xa77   : > { %p2141_p5 = scmp.ne.s32.totalorder %s2670_s1, %s2140_s30  ;;  %p2145_p9 = scmp.lt.u32.totalorder %s2670_s1, %s2760_s0 }
 0xa78   : > { %p2146_p12 = scmp.lt.u32.totalorder %s2144_s14, %s2140_s30  ;;  %p2148_p1 = scmp.lt.u32.totalorder %s2140_s30, %s2670_s1 }
 0xa79   : > { %p2142_p0 = pnand %p2141_p5, %p2438_p6 }
 0xa7a   : > { %p2147_p2 = por %p2146_p12, %p2145_p9 }
 0xa7b   : > { %p2143_p11 = pneg %p2142_p0 }
 0xa7c   : > { %p2149_p4 = por %p2148_p1, %p2147_p2 }
 0xa7e   : > { %p2150_p8 = pnand %p2149_p4, %p2143_p11 }
 0xa80   : > { %2153 = shalt.err (!%p2150_p8)
}
 0xa81   : > { %1912 = dma.vmem_to_hbm [thread:$0]  (%p2438_p6), %s2672_s20, 128, %s2670_s1, %s1582_s21  }
 0xa82 PF: > { %s2761_s12 = sld [smem:[#allocation15_spill]]  ;;  %s2762_s15 = sld [smem:[#allocation16_spill]] }
 0xa83   : > { %p2764_p7 = scmp.ge.s32.totalorder %s2200_s28, 2 }
 0xa88   : > { %s1607_s24 = sand.u32 1, %s2761_s12   ;;  %p2763_p3 = scmp.ne.s32.totalorder %s2762_s15, 0 }
 0xa89   : > { %s1608_s29 = scalar_lea.sflag [#allocation4], %s1607_s24 }
 0xa8a   : > { %p1929_p10 = pnand %p2764_p7, %p2763_p3 }
 0xa8c   : > { %2183 = dma.done.wait (!%p1929_p10), %s1608_s29, 128  }
 0xa8d   : > { %2185 = vsyncadd (!%p1929_p10), %s1608_s29, 4294967168  ;;  %p28_p13 = scmp.ge.s32.totalorder %s2424_s19, 4   ;;  %s2765_s25 = smov %s2192_s26 }
 0xa8e   : > { %s2766_s26 = smov %s2196_s27  ;;  %s2767_s27 = smov %s2434_s13 }
 0xa8f   : > { %s2768_s28 = smov %s2424_s19  ;;  %30 = sbr.rel (!%p28_p13) target bundleno = 13 (0xd), region = 129 }
 0xa96   :  { %1613 = vsyncpa [#allocation3], 1 }
 0xa97   :  { %1615 = vsyncpa [#allocation3 + $0x1], 1 }
 0xa98   :  { %1616 = vsyncpa [#allocation6], 1 }
 0xa99   :  { %1617 = vsyncpa [#allocation9], 1 }
 0xa9a   :  { %1618 = vsyncpa [#allocation4], 1 }
 0xa9b   :  { %1620 = vsyncpa [#allocation4 + $0x1], 1 }

</bundles_post_ra>
